<compile_context>
chip_gen: v5e
topology: v5e:2x2
jax: 0.10.0
libtpu: 0.0.40
codegen_flags: <defaults>
</compile_context>

<pallas_src>
import functools

import jax
import jax.numpy as jnp
from jax.experimental import pallas as pl
from jax.experimental.pallas import tpu as pltpu


# --------------------------------------------------------------------------- #
# Kernel
# --------------------------------------------------------------------------- #
def _lsce_kernel(*refs, smoothing, ignore_index, t_total, has_weights, ragged):
    if has_weights:
        x_ref, tgt_ref, w_ref, loss_ref, cnt_ref = refs
    else:
        x_ref, tgt_ref, loss_ref, cnt_ref = refs
        w_ref = None

    # (C, tile_t): classes on sublanes, time on lanes.  The PyTorch module
    # multiplies class weights into the logits BEFORE log_softmax.
    x = x_ref[0].astype(jnp.float32)                       # (C, tile_t)
    if has_weights:
        x = x * w_ref[...]                                 # (C, 1) broadcast
    tgt = tgt_ref[0]                                       # (1, tile_t) int32

    num_classes, tile_t = x.shape
    eps = smoothing / (num_classes - 1) if num_classes > 1 else 0.0
    confidence = 1.0 - smoothing

    # Stable log-sum-exp over the class (sublane) axis, per time column.
    m = jnp.max(x, axis=0, keepdims=True)                  # (1, tile_t)
    z = x - m
    lse = jnp.log(jnp.sum(jnp.exp(z), axis=0, keepdims=True))

    # z[target] via a one-hot select + sublane reduce (single (C,tile_t) op).
    class_ids = jax.lax.broadcasted_iota(jnp.int32, z.shape, 0)
    onehot = class_ids == tgt
    z_tgt = jnp.sum(jnp.where(onehot, z, 0.0), axis=0, keepdims=True)

    # col_loss = -sum_c(true_dist * log_softmax) = lse - eps*sum_c(z)
    #            - (confidence - eps) * z[target]   (since sum_c(true_dist)==1)
    col_loss = lse - jnp.float32(confidence - eps) * z_tgt
    if eps != 0.0:
        col_loss = col_loss - jnp.float32(eps) * jnp.sum(z, axis=0, keepdims=True)

    # Validity: not ignore_index, and inside the (possibly ragged) last tile.
    valid = tgt != ignore_index                            # (1, tile_t)
    if ragged:
        t = pl.program_id(1)
        col = jax.lax.broadcasted_iota(jnp.int32, (1, tile_t), 1) + t * tile_t
        valid = jnp.logical_and(valid, col < t_total)

    loss_ref[...] = jnp.sum(jnp.where(valid, col_loss, 0.0),
                            axis=1, keepdims=True).reshape(1, 1, 1, 1)
    cnt_ref[...] = jnp.sum(valid.astype(jnp.float32),
                           axis=1, keepdims=True).reshape(1, 1, 1, 1)


# --------------------------------------------------------------------------- #
# Tiling / VMEM budgeting (generation-aware)
# --------------------------------------------------------------------------- #
def _vmem_capacity_bytes():
    try:
        info = pltpu.get_tpu_info()
        cap = getattr(info, "vmem_capacity_bytes", None)
        if cap:
            return int(cap)
    except Exception:
        pass
    return 64 << 20  # conservative fallback (v7x per-TensorCore VMEM)


def _sublane_pack(itemsize):
    return {4: 8, 2: 16, 1: 32}.get(itemsize, 8)


def _pick_tile_t(T, C, itemsize, max_tile=32768):
    """Largest lane tile (<= max_tile) whose double-buffered inputs fit ~35% of VMEM."""
    budget = int(_vmem_capacity_bytes() * 0.35)
    sp = _sublane_pack(itemsize)
    c_pad = -(-C // sp) * sp
    per_lane = 2 * (c_pad * itemsize + 8 * 4)   # 2x logits col + 2x int32 target col
    cap = (budget // per_lane) // 128 * 128
    # TODO(synk): for vocab-scale C (one 128-lane block already over budget) a
    # class-chunked streaming log-softmax over a C grid axis would be needed;
    # here we clamp to 128 lanes and raise vmem_limit_bytes to match.
    cap = max(128, min(cap, max_tile))
    if T <= cap:
        return T            # block == full dim, always layout-legal
    return cap              # multiple of 128; ragged tail masked in-kernel


def _vmem_limit_bytes(C, tile_t, itemsize):
    cap_bytes = _vmem_capacity_bytes()
    sp = _sublane_pack(itemsize)
    c_pad = -(-C // sp) * sp
    lanes = -(-tile_t // 128) * 128
    footprint = (2 * c_pad * lanes * itemsize     # double-buffered logits
                 + 2 * 8 * lanes * 4              # double-buffered int32 targets
                 + c_pad * 128 * 4)               # class weights
    return int(min(0.9 * cap_bytes, max(32 << 20, footprint + (16 << 20))))


# --------------------------------------------------------------------------- #
# Wrapper
# --------------------------------------------------------------------------- #
def label_smoothing_cross_entropy(output, target, class_weights=None,
                                  smoothing=0.1, ignore_index=-100, tile_t=None):
    """output: (B, C, T) logits (f32 or bf16), target: (B, T) int labels."""
    # TODO(synk): the PyTorch module's data-dependent
    # `assert target.max() < num_classes` and its scatter try/except diagnostics
    # have no JIT/Pallas equivalent; omitted.
    B, C, T = output.shape
    itemsize = jnp.dtype(output.dtype).itemsize
    if target.dtype != jnp.int32:
        target = target.astype(jnp.int32)
    tgt = target.reshape(B, 1, T)                 # free metadata reshape

    has_weights = class_weights is not None
    if tile_t is None:
        tile_t = _pick_tile_t(T, C, itemsize)
    n_t = pl.cdiv(T, tile_t)
    ragged = (T % tile_t) != 0

    kernel = functools.partial(
        _lsce_kernel, smoothing=float(smoothing), ignore_index=int(ignore_index),
        t_total=T, has_weights=has_weights, ragged=ragged)

    in_specs = [
        pl.BlockSpec((1, C, tile_t), lambda b, t: (b, 0, t)),   # logits, native layout
        pl.BlockSpec((1, 1, tile_t), lambda b, t: (b, 0, t)),   # targets
    ]
    inputs = [output, tgt]
    if has_weights:
        w = jnp.asarray(class_weights, jnp.float32).reshape(C, 1)
        in_specs.append(pl.BlockSpec((C, 1), lambda b, t: (0, 0)))
        inputs.append(w)

    loss_p, cnt_p = pl.pallas_call(
        kernel,
        out_shape=(jax.ShapeDtypeStruct((B, n_t, 1, 1), jnp.float32),
                   jax.ShapeDtypeStruct((B, n_t, 1, 1), jnp.float32)),
        grid_spec=pltpu.PrefetchScalarGridSpec(
            num_scalar_prefetch=0,
            grid=(B, n_t),
            in_specs=in_specs,
            out_specs=[pl.BlockSpec((1, 1, 1, 1), lambda b, t: (b, t, 0, 0)),
                       pl.BlockSpec((1, 1, 1, 1), lambda b, t: (b, t, 0, 0))],
        ),
        compiler_params=pltpu.CompilerParams(
            dimension_semantics=("parallel", "parallel"),
            vmem_limit_bytes=_vmem_limit_bytes(C, tile_t, itemsize)),
    )(*inputs)

    # Tiny epilogue: combine per-(batch, tile) partials and do the single divide.
    return jnp.sum(loss_p) / (jnp.sum(cnt_p) + 1e-10)


# --------------------------------------------------------------------------- #
# Pure-JAX reference (replica of the PyTorch forward) for verification
# --------------------------------------------------------------------------- #
def _reference(output, target, class_weights=None,
               smoothing=0.1, ignore_index=-100):
    x = jnp.transpose(output, (0, 2, 1)).astype(jnp.float32)   # (B, T, C)
    num_classes = x.shape[-1]
    if class_weights is not None:
        x = x * jnp.asarray(class_weights, jnp.float32)[None, None, :]
    lsm = jax.nn.log_softmax(x, axis=-1)
    onehot = jax.nn.one_hot(target, num_classes, dtype=jnp.float32)
    true_dist = onehot * (1.0 - smoothing) + (1.0 - onehot) * (
        smoothing / (num_classes - 1))
    valid = (target != ignore_index).astype(jnp.float32)       # (B, T)
    true_dist = true_dist * valid[..., None]
    loss = -jnp.sum(true_dist * lsm, axis=-1) * valid
    return jnp.sum(loss) / (jnp.sum(valid) + 1e-10)


if __name__ == "__main__":
    key = jax.random.PRNGKey(0)
    B, C, T = 2, 10, 200                    # batch, num_classes, seq length
    k1, k2 = jax.random.split(key)

    logits = jax.random.normal(k1, (B, C, T), jnp.float32)      # PyTorch (B, C, T) layout
    target = jax.random.randint(k2, (B, T), 0, C).astype(jnp.int32)
    # deterministic ignore_index entries
    target = target.at[0, 3].set(-100).at[1, 7].set(-100)
    # deterministic class weights (module's optional class_weights parameter)
    class_weights = jnp.linspace(0.5, 1.5, C, dtype=jnp.float32)

    # Path 1: multi-tile accumulation + ragged-tail mask + class weights.
    loss = label_smoothing_cross_entropy(
        logits, target, class_weights=class_weights, tile_t=128)
    loss = jax.block_until_ready(loss)
    ref = _reference(logits, target, class_weights=class_weights)
    assert abs(float(loss) - float(ref)) < 1e-4, (float(loss), float(ref))

    # Path 2: auto (VMEM-budgeted) tile, no class weights, bf16 logits.
    loss2 = label_smoothing_cross_entropy(logits.astype(jnp.bfloat16), target)
    loss2 = jax.block_until_ready(loss2)
    ref2 = _reference(logits.astype(jnp.bfloat16), target)
    assert abs(float(loss2) - float(ref2)) < 1e-3, (float(loss2), float(ref2))

    print("KERNEL_OK")
</pallas_src>

<mosaic_0001>
module attributes {stable_mosaic.version = 11 : i64} {
  func.func @_lsce_kernel(%arg0: i32, %arg1: i32, %arg2: memref<1x10x128xf32, #tpu.memory_space<vmem>>, %arg3: memref<1x1x128xi32, #tpu.memory_space<vmem>>, %arg4: memref<10x1xf32, #tpu.memory_space<vmem>>, %arg5: memref<1x1x1x1xf32, #tpu.memory_space<vmem>>, %arg6: memref<1x1x1x1xf32, #tpu.memory_space<vmem>>) attributes {dimension_semantics = [#tpu.dimension_semantics<parallel>, #tpu.dimension_semantics<parallel>], iteration_bounds = array<i64: 2, 2>, scalar_prefetch = 0 : i64, scratch_operands = 0 : i64, tpu.core_type = #tpu.core_type<tc>, window_params = [{transform_indices = @transform_0, window_bounds = array<i64: 1, 10, 128>}, {transform_indices = @transform_1, window_bounds = array<i64: 1, 1, 128>}, {pipeline_mode = #tpu.pipeline_mode<synchronous>, transform_indices = @transform_2, window_bounds = array<i64: 10, 1>}, {transform_indices = @transform_3, window_bounds = array<i64: 1, 1, 1, 1>}, {transform_indices = @transform_4, window_bounds = array<i64: 1, 1, 1, 1>}]} {
    %c0 = arith.constant 0 : index
    %c0_0 = arith.constant 0 : index
    %c0_1 = arith.constant 0 : index
    %0 = vector.load %arg2[%c0, %c0_0, %c0_1] : memref<1x10x128xf32, #tpu.memory_space<vmem>>, vector<1x10x128xf32>
    %1 = vector.shape_cast %0 : vector<1x10x128xf32> to vector<10x128xf32>
    %c0_2 = arith.constant 0 : index
    %c0_3 = arith.constant 0 : index
    %2 = vector.load %arg4[%c0_2, %c0_3] : memref<10x1xf32, #tpu.memory_space<vmem>>, vector<10x1xf32>
    %3 = vector.broadcast %2 : vector<10x1xf32> to vector<10x128xf32>
    %4 = arith.mulf %1, %3 : vector<10x128xf32>
    %c0_4 = arith.constant 0 : index
    %c0_5 = arith.constant 0 : index
    %c0_6 = arith.constant 0 : index
    %5 = vector.load %arg3[%c0_4, %c0_5, %c0_6] : memref<1x1x128xi32, #tpu.memory_space<vmem>>, vector<1x1x128xi32>
    %6 = vector.shape_cast %5 : vector<1x1x128xi32> to vector<1x128xi32>
    %cst = arith.constant dense<0xFF800000> : vector<128xf32>
    %7 = vector.multi_reduction <maximumf>, %4, %cst [0] : vector<10x128xf32> to vector<128xf32>
    %8 = vector.shape_cast %7 : vector<128xf32> to vector<1x128xf32>
    %9 = vector.broadcast %8 : vector<1x128xf32> to vector<10x128xf32>
    %10 = arith.subf %4, %9 : vector<10x128xf32>
    %11 = math.exp %10 : vector<10x128xf32>
    %cst_7 = arith.constant dense<0.000000e+00> : vector<128xf32>
    %12 = vector.multi_reduction <add>, %11, %cst_7 [0] : vector<10x128xf32> to vector<128xf32>
    %13 = vector.shape_cast %12 : vector<128xf32> to vector<1x128xf32>
    %14 = math.log %13 : vector<1x128xf32>
    %15 = tpu.iota {dimensions = array<i32: 0>} : vector<10x128xi32>
    %16 = vector.broadcast %6 : vector<1x128xi32> to vector<10x128xi32>
    %17 = arith.cmpi eq, %15, %16 : vector<10x128xi32>
    %cst_8 = arith.constant 0.000000e+00 : f32
    %18 = vector.broadcast %cst_8 : f32 to vector<10x128xf32>
    %19 = arith.select %17, %10, %18 : vector<10x128xi1>, vector<10x128xf32>
    %cst_9 = arith.constant dense<0.000000e+00> : vector<128xf32>
    %20 = vector.multi_reduction <add>, %19, %cst_9 [0] : vector<10x128xf32> to vector<128xf32>
    %21 = vector.shape_cast %20 : vector<128xf32> to vector<1x128xf32>
    %cst_10 = arith.constant 0.888888895 : f32
    %22 = vector.broadcast %cst_10 : f32 to vector<1x128xf32>
    %23 = arith.mulf %22, %21 : vector<1x128xf32>
    %24 = arith.subf %14, %23 : vector<1x128xf32>
    %cst_11 = arith.constant dense<0.000000e+00> : vector<128xf32>
    %25 = vector.multi_reduction <add>, %10, %cst_11 [0] : vector<10x128xf32> to vector<128xf32>
    %26 = vector.shape_cast %25 : vector<128xf32> to vector<1x128xf32>
    %cst_12 = arith.constant 0.0111111114 : f32
    %27 = vector.broadcast %cst_12 : f32 to vector<1x128xf32>
    %28 = arith.mulf %27, %26 : vector<1x128xf32>
    %29 = arith.subf %24, %28 : vector<1x128xf32>
    %c-100_i32 = arith.constant -100 : i32
    %30 = vector.broadcast %c-100_i32 : i32 to vector<1x128xi32>
    %31 = arith.cmpi ne, %6, %30 : vector<1x128xi32>
    %32 = tpu.iota {dimensions = array<i32: 1>} : vector<1x128xi32>
    %c128_i32 = arith.constant 128 : i32
    %33 = arith.muli %arg1, %c128_i32 : i32
    %34 = vector.broadcast %33 : i32 to vector<1x128xi32>
    %35 = arith.addi %32, %34 : vector<1x128xi32>
    %c200_i32 = arith.constant 200 : i32
    %36 = vector.broadcast %c200_i32 : i32 to vector<1x128xi32>
    %37 = arith.cmpi slt, %35, %36 : vector<1x128xi32>
    %38 = arith.andi %31, %37 : vector<1x128xi1>
    %cst_13 = arith.constant 0.000000e+00 : f32
    %39 = vector.broadcast %cst_13 : f32 to vector<1x128xf32>
    %40 = arith.select %38, %29, %39 : vector<1x128xi1>, vector<1x128xf32>
    %cst_14 = arith.constant dense<0.000000e+00> : vector<1xf32>
    %41 = vector.multi_reduction <add>, %40, %cst_14 [1] : vector<1x128xf32> to vector<1xf32>
    %42 = vector.shape_cast %41 : vector<1xf32> to vector<1x1xf32>
    %43 = vector.shape_cast %42 : vector<1x1xf32> to vector<1x1x1x1xf32>
    %c0_15 = arith.constant 0 : index
    %c0_16 = arith.constant 0 : index
    %c0_17 = arith.constant 0 : index
    %c0_18 = arith.constant 0 : index
    %44 = vector.load %arg5[%c0_15, %c0_16, %c0_17, %c0_18] : memref<1x1x1x1xf32, #tpu.memory_space<vmem>>, vector<1x1x1x1xf32>
    tpu.vector_store %arg5[%c0_15, %c0_16, %c0_17, %c0_18], %43 {strides = array<i32>} : memref<1x1x1x1xf32, #tpu.memory_space<vmem>>, vector<1x1x1x1xf32>,
    %45 = arith.extui %38 : vector<1x128xi1> to vector<1x128xi32>
    %46 = arith.sitofp %45 : vector<1x128xi32> to vector<1x128xf32>
    %cst_19 = arith.constant dense<0.000000e+00> : vector<1xf32>
    %47 = vector.multi_reduction <add>, %46, %cst_19 [1] : vector<1x128xf32> to vector<1xf32>
    %48 = vector.shape_cast %47 : vector<1xf32> to vector<1x1xf32>
    %49 = vector.shape_cast %48 : vector<1x1xf32> to vector<1x1x1x1xf32>
    %c0_20 = arith.constant 0 : index
    %c0_21 = arith.constant 0 : index
    %c0_22 = arith.constant 0 : index
    %c0_23 = arith.constant 0 : index
    %50 = vector.load %arg6[%c0_20, %c0_21, %c0_22, %c0_23] : memref<1x1x1x1xf32, #tpu.memory_space<vmem>>, vector<1x1x1x1xf32>
    tpu.vector_store %arg6[%c0_20, %c0_21, %c0_22, %c0_23], %49 {strides = array<i32>} : memref<1x1x1x1xf32, #tpu.memory_space<vmem>>, vector<1x1x1x1xf32>,
    return
  }
  func.func @transform_0(%arg0: i32, %arg1: i32) -> (i32, i32, i32) {
    %c0_i32 = arith.constant 0 : i32
    %c0_i32_0 = arith.constant 0 : i32
    return %arg0, %c0_i32, %arg1 : i32, i32, i32
  }
  func.func @transform_1(%arg0: i32, %arg1: i32) -> (i32, i32, i32) {
    %c0_i32 = arith.constant 0 : i32
    %c0_i32_0 = arith.constant 0 : i32
    return %arg0, %c0_i32, %arg1 : i32, i32, i32
  }
  func.func @transform_2(%arg0: i32, %arg1: i32) -> (i32, i32) {
    %c0_i32 = arith.constant 0 : i32
    %c0_i32_0 = arith.constant 0 : i32
    %c0_i32_1 = arith.constant 0 : i32
    return %c0_i32, %c0_i32_0 : i32, i32
  }
  func.func @transform_3(%arg0: i32, %arg1: i32) -> (i32, i32, i32, i32) {
    %c0_i32 = arith.constant 0 : i32
    %c0_i32_0 = arith.constant 0 : i32
    %c0_i32_1 = arith.constant 0 : i32
    return %arg0, %arg1, %c0_i32, %c0_i32_0 : i32, i32, i32, i32
  }
  func.func @transform_4(%arg0: i32, %arg1: i32) -> (i32, i32, i32, i32) {
    %c0_i32 = arith.constant 0 : i32
    %c0_i32_0 = arith.constant 0 : i32
    %c0_i32_1 = arith.constant 0 : i32
    return %arg0, %arg1, %c0_i32, %c0_i32_0 : i32, i32, i32, i32
  }
}

</mosaic_0001>

<bundles_post_ra>
// kernel: tpu_custom_call.1
= control target key start
LH: loop header
LB: loop body
LE: loop exit
PB: predicated region body
PF: predicated region fallthrough
CT: control target
= control target key end

     0   :  { %s700_s15 = smov 0   ;;  %s702_s16 = smov 0   ;;  %s817_s0 = inlined_call_operand.vmem [shape: f32[2,10,200], index: 0, kind: input, shape index: {}]   ;;  %s818_s1 = inlined_call_operand.vmem [shape: s32[2,1,200], index: 1, kind: input, shape index: {}]   ;;  %s819_s2 = inlined_call_operand.vmem [shape: f32[10,1], index: 2, kind: input, shape index: {}]   ;;  %s820_s3 = inlined_call_operand.vmem [shape: f32[2,2,1,1], index: 3, kind: output, shape index: {0}]   ;;  %s821_s4 = inlined_call_operand.vmem [shape: f32[2,2,1,1], index: 4, kind: output, shape index: {1}]  }
   0x1   :  { %s704_s17 = smov 0   ;;  %s706_s18 = smov 0  }
   0x2   :  { %s708_s19 = smov 0   ;;  %s710_s20 = smov 0  }
   0x3   :  { %s712_s21 = smov 0  }
   0x4 LB: > { %s24_s22 = sadd.s32 1, %s663_s19  ;;  %s27_s23 = sadd.s32 1, %s667_s20  ;;  %s671_s21 = sphi %s712_s21, %s15_s21   ;;  %s667_s20 = sphi %s710_s20, %s827_s20   ;;  %s663_s19 = sphi %s708_s19, %s826_s19   ;;  %s659_s18 = sphi %s706_s18, %s825_s18   ;;  %s655_s17 = sphi %s704_s17, %s824_s17   ;;  %s651_s16 = sphi %s702_s16, %s823_s16   ;;  %s647_s15 = sphi %s700_s15, %s822_s15  }
   0x5   : > { %p25_p0 = scmp.ge.s32.totalorder %s24_s22, 2  ;;  %p43_p1 = scmp.ne.s32.totalorder %s651_s16, %s647_s15 }
   0x6   : > { %p44_p2 = scmp.eq.s32.totalorder %s671_s21, 0  ;;  %s36_s27 = sadd.s32 1, %s651_s16 }
   0x7   : > { %s829_s22 = smov (%p25_p0, %s24_s22), 0  ;;  %s831_s23 = smov (!%p25_p0, %s27_s23), %s667_s20 }
   0x8   : > { %p45_p3 = por %p44_p2, %p43_p1  ;;  %p29_p4 = scmp.ge.s32.totalorder %s831_s23, 2 }
   0x9   : > { %s32_s24 = ssub.s32 %s663_s19, %s829_s22  ;;  %p538_p6 = scmp.ge.s32.totalorder %s671_s21, 4 }
   0xa   : > { %s833_s23 = smov (%p29_p4, %s831_s23), 0 }
   0xb   : > { %s31_s25 = ssub.s32 %s667_s20, %s833_s23  ;;  %177 = sbr.rel (%p538_p6) target bundleno = 24 (0x18), region = 20 }
   0xc   : > { %s33_s26 = sor.u32 %s32_s24, %s31_s25 }
   0xd   : > { %p34_p5 = scmp.eq.s32.totalorder %s33_s26, 0 }
   0xf   : > { %s751_s28 = scalar_select %p34_p5, %s651_s16, %s36_s27  }
  0x10   : > { %180 = sbr.rel (!%p45_p3) target bundleno = 24 (0x18), region = 24  ;;  %s182_s29 = sand.u32 (%p45_p3), 1, %s651_s16  }
  0x11   : > { %s540_s30 = sshll.u32 (%p45_p3), %s667_s20, 2  ;;  %s539_s5 = sshll.u32 (%p45_p3), %s182_s29, 4 }
  0x12   : > { %s186_s6 = sadd.s32 (%p45_p3), %s663_s19, %s540_s30  ;;  %s184_s11 = scalar_lea.vmem (%p45_p3), [#allocation2], %s539_s5 }
  0x13   : > { %s541_s7 = sshll.u32 (%p45_p3), %s186_s6, 3 }
  0x14   : > { %s188_s10 = scalar_lea.vmem (%p45_p3), %s817_s0, %s541_s7 }
  0x15   : > { %v219_v0 = vld [vmem:[%s188_s10] sm:$0xff]  ;;  %v221_v1 = vld [vmem:[%s188_s10 + $0x10] sm:$0xff] }
  0x16   : > { %220 = vst [vmem:[%s184_s11] sm:$0xff] %v219_v0 }
  0x17   : > { %222 = vst [vmem:[%s184_s11 + $0x8] sm:$0xff] %v221_v1 }
  0x18 PF: > { %p542_p7 = scmp.ge.s32.totalorder %s671_s21, 1  ;;  %p237_p8 = scmp.lt.s32.totalorder %s671_s21, 5 }
  0x1a   : > { %p238_p9 = pnand %p542_p7, %p237_p8 }
  0x1b   : > { %s244_s25 = sand.u32 (!%p238_p9), 1, %s647_s15   ;;  %p285_p10 = scmp.lt.s32.totalorder (!%p238_p9), %s659_s18, 1 }
  0x1c   : > { %241 = sbr.rel (%p238_p9) target bundleno = 341 (0x155), region = 66  ;;  %s543_s26 = sshll.u32 (!%p238_p9), %s244_s25, 4 }
  0x1d   : > { %s246_s27 = scalar_lea.vmem (!%p238_p9), [#allocation2], %s543_s26  ;;  %p287_p11 = scmp.lt.s32.totalorder (!%p238_p9), %s655_s17, 1 }
  0x21   : > { %v309_v2 = vld [vmem:[%s819_s2 + $0x8] sm:$0x3]  ;;  %v673_v3 = vmov 0   ;;  %v308_v4 = vld [vmem:[%s819_s2] sm:$0xff]  ;;  %vm323_vm0 = vcmask 1041408   ;;  %s835_s18 = smov (!%p285_p10, %s659_s18), 1  ;;  %v348_v14 = vlaneseq }
  0x22   : > { %609 = vset.pattern.permute.xlu0 %v673_v3  ;;  %v307_v6 = vld [vmem:[%s246_s27 + $0x8] sm:$0x3]  ;;  %v306_v8 = vld [vmem:[%s246_s27] sm:$0xff]  ;;  %s288_s29 = scalar_select %p287_p11, %s655_s17, 1  ;;  %vm385_vm6 = vcmask 1040384   ;;  %v674_v3 = vmov 0.0  }
  0x23   : > { %317 = vperm.xlu0 %609, %v309_v2   ;;  %s544_s30 = sshll.u32 %s835_s18, 1  ;;  %v349_v17 = vshrl.u32 %v348_v14, 7  ;;  %s547_s18 = sshll.u32 %s655_s17, 7  ;;  %v378_v52 = vand.u32 127, %v348_v14  ;;  %vm389_vm7 = vcmask 0  }
  0x24   : > { %s774_s15 = sadd.s32 %s544_s30, %s288_s29  ;;  %v380_v53 = vstv %s547_s18 }
  0x25   : > { %s780_s7 = scalar_lea.vmem %s818_s1, %s774_s15  ;;  %v350_v20 = vadd.s32 8, %v349_v17  ;;  %v381_v56 = vadd.s32 %v380_v53, %v378_v52  ;;  %s298_s9 = scalar_lea.vmem %s820_s3, %s774_s15 }
  0x26   : > { %v610_v21 = vld [vmem:[%s780_s7] ss:$0 sm:$0xff]  ;;  %s305_s12 = scalar_lea.vmem %s821_s4, %s774_s15 }
  0x27   : > { %vm352_vm1 = vcmp.eq.s32.totalorder %v349_v17, %v610_v21  ;;  %vm353_vm2 = vcmp.eq.s32.totalorder %v350_v20, %v610_v21  ;;  %v322_v57 = vld [vmem:[%s780_s7] sm:$0x1]  ;;  %vm382_vm4 = vcmp.lt.s32.totalorder %v381_v56, 200 }
  0x28   : > { %vm376_vm3 = vcmp.ne.s32.totalorder %v322_v57, 4294967196 }
  0x29   : > { %vm383_vm5 = vmand %vm376_vm3, %vm382_vm4 }
  0x2b   : > { %312 = vperm.xlu0 %609, %v308_v4   ;;  %v548_v4 = vsel %vm383_vm5, 1.0, %v674_v3 }
  0x95   : > { %v318_v5 = vpop.permute.xlu0 %317 }
  0x96   : > { %v321_v7 = vmul.f32 %v318_v5, %v307_v6  ;;  %v393_v5 = vsel %vm385_vm6, %v548_v4, 0.0 }
  0x98   : > { %v324_v11 = vsel %vm323_vm0, %v321_v7, -inf }
  0x9d   : > { %v313_v9 = vpop.permute.xlu0 %312 }
  0x9e   : > { %v320_v10 = vmul.f32 %v313_v9, %v306_v8 }
  0xa0   : > { %v325_v12 = vmax.f32 %v320_v10, %v324_v11 }
  0xa2   : > { %v326_v13 = vrot.slane %v325_v12, 4 }
  0xa4   : > { %v327_v15 = vmax.f32 %v325_v12, %v326_v13 }
  0xa6   : > { %v328_v16 = vrot.slane %v327_v15, 2 }
  0xa8   : > { %v329_v18 = vmax.f32 %v327_v15, %v328_v16 }
  0xaa   : > { %v330_v19 = vrot.slane %v329_v18, 1 }
  0xac   : > { %v331_v22 = vmax.f32 %v329_v18, %v330_v19 }
  0xae   : > { %v332_v23 = vsub.f32 %v320_v10, %v331_v22  ;;  %v333_v24 = vsub.f32 %v321_v7, %v331_v22 }
  0xb0   : > { %v334_v25 = vmul.f32 1.442695, %v332_v23  ;;  %v336_v26 = vmul.f32 1.442695, %v333_v24  ;;  %v354_v27 = vsel %vm352_vm1, %v332_v23, 0.0  ;;  %v355_v28 = vsel %vm353_vm2, %v333_v24, 0.0 }
  0xb1   : > { %v356_v29 = vsel %vm323_vm0, %v355_v28, 0.0  ;;  %v366_v30 = vsel %vm323_vm0, %v333_v24, 0.0 }
  0xb2   : > { %611 = vpow2.f32 %v334_v25  ;;  %v357_v31 = vadd.f32 %v356_v29, %v354_v27  ;;  %v367_v32 = vadd.f32 %v366_v30, %v332_v23 }
  0xb3   : > { %613 = vpow2.f32 %v336_v26 }
  0xb4   : > { %v358_v34 = vrot.slane %v357_v31, 4  ;;  %v368_v37 = vrot.slane %v367_v32, 4 }
  0xb6   : > { %v359_v39 = vadd.f32 %v358_v34, %v357_v31  ;;  %v369_v41 = vadd.f32 %v368_v37, %v367_v32 }
  0xb8   : > { %v612_v33 = vpop.eup %611  ;;  %v360_v43 = vrot.slane %v359_v39, 2  ;;  %v370_v45 = vrot.slane %v369_v41, 2 }
  0xb9   : > { %v614_v35 = vpop.eup %613 }
  0xba   : > { %v338_v36 = vsel %vm323_vm0, %v614_v35, 0.0  ;;  %v361_v47 = vadd.f32 %v360_v43, %v359_v39  ;;  %v371_v49 = vadd.f32 %v370_v45, %v369_v41 }
  0xbb   : > { %v339_v38 = vadd.f32 %v612_v33, %v338_v36 }
  0xbc   : > { %v362_v51 = vrot.slane %v361_v47, 1  ;;  %v372_v54 = vrot.slane %v371_v49, 1 }
  0xbd   : > { %v340_v40 = vrot.slane %v339_v38, 4 }
  0xbe   : > { %v363_v55 = vadd.f32 %v362_v51, %v361_v47  ;;  %v373_v58 = vadd.f32 %v372_v54, %v371_v49 }
  0xbf   : > { %v341_v42 = vadd.f32 %v340_v40, %v339_v38 }
  0xc0   : > { %v364_v61 = vmul.f32 0.8888889, %v363_v55  ;;  %v374_v63 = vmul.f32 0.011111111, %v373_v58 }
  0xc1   : > { %v342_v44 = vrot.slane %v341_v42, 2 }
  0xc3   : > { %v343_v46 = vadd.f32 %v342_v44, %v341_v42 }
  0xc5   : > { %v344_v48 = vrot.slane %v343_v46, 1 }
  0xc7   : > { %v345_v50 = vadd.f32 %v344_v48, %v343_v46 }
  0xc9   : > { %615 = vlog2.f32 %v345_v50 }
  0xcf   : > { %v616_v59 = vpop.eup %615 }
  0xd0   : > { %v347_v60 = vmul.f32 0.6931472, %v616_v59 }
  0xd2   : > { %v365_v62 = vsub.f32 %v347_v60, %v364_v61 }
  0xd4   : > { %v375_v0 = vsub.f32 %v365_v62, %v374_v63 }
  0xd6   : > { %v384_v1 = vsel %vm383_vm5, %v375_v0, 0.0 }
  0xd7   : > { %v386_v2 = vsel %vm385_vm6, %v384_v1, 0.0 }
  0xd8   : > { %387 = vadd.xlane.f32.xlu1 %v386_v2 }
  0xe0   : > { %394 = vadd.xlane.f32.xlu1 %v393_v5 }
 0x14b   : > { %v388_v6 = vpop.xlane.xlu1 %387 }
 0x14c   : > { %390 = vst.msk [vmem:[%s298_s9] sm:$0x1] %vm389_vm7, %v388_v6 }
 0x153   : > { %v395_v7 = vpop.xlane.xlu1 %394 }
 0x154   : > { %396 = vst.msk [vmem:[%s305_s12] sm:$0x1] %vm389_vm7, %v395_v7 }
 0x155 PF: > { %s15_s21 = sadd.s32 1, %s671_s21   ;;  %s822_s15 = smov %s651_s16 }
 0x156   : > { %p12_p12 = scmp.ge.s32.totalorder %s15_s21, 6   ;;  %s823_s16 = smov %s751_s28 }
 0x157   : > { %s824_s17 = smov %s663_s19  ;;  %s825_s18 = smov %s667_s20 }
 0x158   : > { %s826_s19 = smov %s829_s22  ;;  %s827_s20 = smov %s833_s23 }
 0x159   :  { %14 = sbr.rel (!%p12_p12) target bundleno = 4 (0x4), region = 120 }

</bundles_post_ra>
